<compile_context>
chip_gen: v5e
topology: v5e:2x2
jax: 0.10.0
libtpu: 0.0.40
codegen_flags: <defaults>
</compile_context>

<pallas_src>
import functools

import jax
import jax.numpy as jnp
from jax.experimental import pallas as pl
from jax.experimental.pallas import tpu as pltpu


def _round_up(x, m):
    return (x + m - 1) // m * m


# --------------------------------------------------------------------------
# Stage 1: per-graph GNN + masked mean pool (grid over graphs).
# --------------------------------------------------------------------------
def _gnn_pool_kernel(gnn_iter, n_nodes,
                     x_ref, adj_ref,
                     w_in_ref, b_in_ref,
                     w_gnn_ref, b_gnn_ref,
                     pooled_ref):
    f32 = jnp.float32
    bf16 = jnp.bfloat16

    x = x_ref[0]                      # [N_pad, F_pad] bf16
    adj = adj_ref[0]                  # [N_pad, N_pad] bf16
    n_pad, h_pad = x.shape[0], w_in_ref.shape[1]

    # input projection (bf16 MXU operands, f32 accumulate)
    h = jnp.maximum(
        jnp.dot(x, w_in_ref[...], preferred_element_type=f32) + b_in_ref[...],
        0.0)                          # [N_pad, H_pad] f32

    # hoist weight read and bias broadcast out of the message-passing loop
    w_gnn = w_gnn_ref[...]            # [H_pad, H_pad] bf16
    b_gnn = jnp.broadcast_to(b_gnn_ref[...], (n_pad, h_pad))   # f32

    def gnn_step(h):
        msg = jnp.dot(adj, h.astype(bf16), preferred_element_type=f32)
        return jnp.maximum(
            jnp.dot(msg.astype(bf16), w_gnn, preferred_element_type=f32)
            + b_gnn,
            0.0)

    if gnn_iter <= 4:
        for _ in range(gnn_iter):     # small static unroll
            h = gnn_step(h)
    else:                             # bound live ranges for large gnn_iter
        h = jax.lax.fori_loop(0, gnn_iter, lambda i, hh: gnn_step(hh), h)

    # masked mean pool over the REAL nodes only (padded rows carry relu(bias))
    node_id = jax.lax.broadcasted_iota(jnp.int32, (n_pad, 1), 0)
    mask = jnp.where(node_id < n_nodes, 1.0, 0.0).astype(f32)
    pooled = jnp.sum(h * mask, axis=0, keepdims=True) * f32(1.0 / n_nodes)
    pooled_ref[0] = pooled            # [1, H_pad]


# --------------------------------------------------------------------------
# Stage 2: batched readout + decoder MLP on the stacked pooled features.
# --------------------------------------------------------------------------
def _readout_decoder_kernel(pooled_ref,
                            w_r1_ref, b_r1_ref, w_r2_ref, b_r2_ref,
                            w_d1_ref, b_d1_ref, w_d2_ref, b_d2_ref,
                            out_ref):
    f32 = jnp.float32
    bf16 = jnp.bfloat16

    g = pooled_ref[...].astype(bf16)                                  # [B, H]
    r = jnp.maximum(
        jnp.dot(g, w_r1_ref[...], preferred_element_type=f32) + b_r1_ref[...],
        0.0)
    latent = (jnp.dot(r.astype(bf16), w_r2_ref[...],
                      preferred_element_type=f32) + b_r2_ref[...])    # [B, L]
    d = jnp.maximum(
        jnp.dot(latent.astype(bf16), w_d1_ref[...],
                preferred_element_type=f32) + b_d1_ref[...],
        0.0)
    logits = (jnp.dot(d.astype(bf16), w_d2_ref[...],
                      preferred_element_type=f32) + b_d2_ref[...])    # [B, F]
    out_ref[...] = jax.nn.sigmoid(logits)


# --------------------------------------------------------------------------
# Wrapper: pad to lane/sublane-friendly shapes, run the two kernels.
# --------------------------------------------------------------------------
def gae_forward(x, adj, params, *, gnn_iter):
    (w_in, b_in, w_gnn, b_gnn, w_r1, b_r1, w_r2, b_r2,
     w_d1, b_d1, w_d2, b_d2) = params

    B, N, F_in = x.shape
    H = w_in.shape[1]
    L = w_r2.shape[1]

    F_pad = _round_up(F_in, 128)
    H_pad = _round_up(H, 128)
    L_pad = _round_up(L, 128)
    N_pad = _round_up(N, 16)          # bf16 sublane packing

    bf16 = jnp.bfloat16
    f32 = jnp.float32

    # zero-pad; MXU operands -> bf16, biases stay f32
    x_p = jnp.zeros((B, N_pad, F_pad), bf16).at[:, :N, :F_in].set(x.astype(bf16))
    adj_p = jnp.zeros((B, N_pad, N_pad), bf16).at[:, :N, :N].set(adj.astype(bf16))

    def pad_w(w, r, c):
        return jnp.zeros((r, c), bf16).at[:w.shape[0], :w.shape[1]].set(w.astype(bf16))

    def pad_b(b, c):
        return jnp.zeros((1, c), f32).at[:, :b.shape[1]].set(b.astype(f32))

    w_in_p, b_in_p = pad_w(w_in, F_pad, H_pad), pad_b(b_in, H_pad)
    w_gnn_p, b_gnn_p = pad_w(w_gnn, H_pad, H_pad), pad_b(b_gnn, H_pad)
    w_r1_p, b_r1_p = pad_w(w_r1, H_pad, H_pad), pad_b(b_r1, H_pad)
    w_r2_p, b_r2_p = pad_w(w_r2, H_pad, L_pad), pad_b(b_r2, L_pad)
    w_d1_p, b_d1_p = pad_w(w_d1, L_pad, H_pad), pad_b(b_d1, H_pad)
    w_d2_p, b_d2_p = pad_w(w_d2, H_pad, F_pad), pad_b(b_d2, F_pad)

    const2 = lambda b: (0, 0)          # weights stay VMEM-resident across grid

    # ---- stage 1: GNN + pool, grid over graphs -----------------------------
    pooled = pl.pallas_call(
        functools.partial(_gnn_pool_kernel, gnn_iter, N),
        out_shape=jax.ShapeDtypeStruct((B, 1, H_pad), f32),
        grid=(B,),
        in_specs=[
            pl.BlockSpec((1, N_pad, F_pad), lambda b: (b, 0, 0)),
            pl.BlockSpec((1, N_pad, N_pad), lambda b: (b, 0, 0)),
            pl.BlockSpec((F_pad, H_pad), const2),
            pl.BlockSpec((1, H_pad), const2),
            pl.BlockSpec((H_pad, H_pad), const2),
            pl.BlockSpec((1, H_pad), const2),
        ],
        out_specs=pl.BlockSpec((1, 1, H_pad), lambda b: (b, 0, 0)),
        compiler_params=pltpu.CompilerParams(
            dimension_semantics=("parallel",)),
    )(x_p, adj_p, w_in_p, b_in_p, w_gnn_p, b_gnn_p)

    # ---- stage 2: batched readout + decoder MLP ----------------------------
    pooled2 = pooled.reshape(B, H_pad)
    vmem = pl.BlockSpec(memory_space=pltpu.MemorySpace.VMEM)
    out = pl.pallas_call(
        _readout_decoder_kernel,
        out_shape=jax.ShapeDtypeStruct((B, F_pad), f32),
        in_specs=[vmem] * 9,
        out_specs=vmem,
    )(pooled2, w_r1_p, b_r1_p, w_r2_p, b_r2_p,
      w_d1_p, b_d1_p, w_d2_p, b_d2_p)

    return out[:, :F_in]


# --------------------------------------------------------------------------
# Parameters + pure-JAX reference (mirrors the kernel's bf16-matmul numerics).
# --------------------------------------------------------------------------
def init_params(key, input_size, hidden_size, latent_size):
    ks = jax.random.split(key, 7)

    def lin(k, fan_in, fan_out):
        kw, kb = jax.random.split(k)
        w = (jax.random.normal(kw, (fan_in, fan_out), jnp.float32)
             * (1.0 / jnp.sqrt(fan_in)))
        b = 0.1 * jax.random.normal(kb, (1, fan_out), jnp.float32)
        return w, b

    w_in, b_in = lin(ks[0], input_size, hidden_size)     # GNN input projection
    w_gnn, b_gnn = lin(ks[1], hidden_size, hidden_size)  # GNN message/update
    w_r1, b_r1 = lin(ks[2], hidden_size, hidden_size)    # readout layer 1
    w_r2, b_r2 = lin(ks[3], hidden_size, latent_size)    # readout layer 2
    w_d1, b_d1 = lin(ks[4], latent_size, hidden_size)    # decoder Linear 1
    w_d2, b_d2 = lin(ks[5], hidden_size, input_size)     # decoder Linear 2
    return (w_in, b_in, w_gnn, b_gnn, w_r1, b_r1, w_r2, b_r2,
            w_d1, b_d1, w_d2, b_d2)


def gae_reference(x, adj, params, *, gnn_iter):
    (w_in, b_in, w_gnn, b_gnn, w_r1, b_r1, w_r2, b_r2,
     w_d1, b_d1, w_d2, b_d2) = params
    bf16 = jnp.bfloat16

    def mm(a, b):
        return jnp.dot(a.astype(bf16), b.astype(bf16),
                       preferred_element_type=jnp.float32)

    def single(xg, ag):
        h = jax.nn.relu(mm(xg, w_in) + b_in)
        for _ in range(gnn_iter):
            h = jax.nn.relu(mm(mm(ag, h), w_gnn) + b_gnn)
        g = jnp.mean(h, axis=0, keepdims=True)
        r = jax.nn.relu(mm(g, w_r1) + b_r1)
        latent = mm(r, w_r2) + b_r2
        d = jax.nn.relu(mm(latent, w_d1) + b_d1)
        return jax.nn.sigmoid(mm(d, w_d2) + b_d2)[0]

    return jax.vmap(single)(x, adj)


if __name__ == "__main__":
    # small synthetic batch of graphs consistent with
    # GAE(input_size, hidden_size, latent_size, mlp_arch, gnn_iter, gnn_async)
    B = 8              # batch of graphs (multiple of 8 -> sublane-dense MLP)
    N = 8              # nodes per graph
    input_size = 16
    hidden_size = 32
    latent_size = 8
    gnn_iter = 3       # mlp_arch / gnn_async have no effect in this synthetic GNN

    key = jax.random.PRNGKey(0)
    kx, ka, kp = jax.random.split(key, 3)

    x = jax.random.normal(kx, (B, N, input_size), jnp.float32)
    # symmetric 0/1 adjacency with self loops, per graph
    a = (jax.random.uniform(ka, (B, N, N)) > 0.5).astype(jnp.float32)
    adj = jnp.clip(a + jnp.swapaxes(a, 1, 2)
                   + jnp.eye(N, dtype=jnp.float32)[None], 0.0, 1.0)

    params = init_params(kp, input_size, hidden_size, latent_size)

    adj_rec = gae_forward(x, adj, params, gnn_iter=gnn_iter)
    adj_rec = jax.block_until_ready(adj_rec)

    ref = gae_reference(x, adj, params, gnn_iter=gnn_iter)
    assert adj_rec.shape == (B, input_size)
    assert bool(jnp.all(jnp.isfinite(adj_rec)))
    assert jnp.allclose(adj_rec, ref, atol=2e-3, rtol=2e-3)

    print("KERNEL_OK")
</pallas_src>

<mosaic_0001>
module attributes {stable_mosaic.version = 11 : i64} {
  func.func @_gnn_pool_kernel(%arg0: i32, %arg1: memref<1x16x128xbf16, #tpu.memory_space<vmem>>, %arg2: memref<1x16x16xbf16, #tpu.memory_space<vmem>>, %arg3: memref<128x128xbf16, #tpu.memory_space<vmem>>, %arg4: memref<1x128xf32, #tpu.memory_space<vmem>>, %arg5: memref<128x128xbf16, #tpu.memory_space<vmem>>, %arg6: memref<1x128xf32, #tpu.memory_space<vmem>>, %arg7: memref<1x1x128xf32, #tpu.memory_space<vmem>>) attributes {dimension_semantics = [#tpu.dimension_semantics<parallel>], iteration_bounds = array<i64: 8>, scalar_prefetch = 0 : i64, scratch_operands = 0 : i64, tpu.core_type = #tpu.core_type<tc>, window_params = [{transform_indices = @transform_0, window_bounds = array<i64: 1, 16, 128>}, {transform_indices = @transform_1, window_bounds = array<i64: 1, 16, 16>}, {pipeline_mode = #tpu.pipeline_mode<synchronous>, transform_indices = @transform_2, window_bounds = array<i64: 128, 128>}, {pipeline_mode = #tpu.pipeline_mode<synchronous>, transform_indices = @transform_3, window_bounds = array<i64: 1, 128>}, {pipeline_mode = #tpu.pipeline_mode<synchronous>, transform_indices = @transform_4, window_bounds = array<i64: 128, 128>}, {pipeline_mode = #tpu.pipeline_mode<synchronous>, transform_indices = @transform_5, window_bounds = array<i64: 1, 128>}, {transform_indices = @transform_6, window_bounds = array<i64: 1, 1, 128>}]} {
    %c0 = arith.constant 0 : index
    %c0_0 = arith.constant 0 : index
    %c0_1 = arith.constant 0 : index
    %0 = vector.load %arg1[%c0, %c0_0, %c0_1] : memref<1x16x128xbf16, #tpu.memory_space<vmem>>, vector<1x16x128xbf16>
    %1 = vector.shape_cast %0 : vector<1x16x128xbf16> to vector<16x128xbf16>
    %c0_2 = arith.constant 0 : index
    %c0_3 = arith.constant 0 : index
    %c0_4 = arith.constant 0 : index
    %2 = vector.load %arg2[%c0_2, %c0_3, %c0_4] : memref<1x16x16xbf16, #tpu.memory_space<vmem>>, vector<1x16x16xbf16>
    %3 = vector.shape_cast %2 : vector<1x16x16xbf16> to vector<16x16xbf16>
    %c0_5 = arith.constant 0 : index
    %c0_6 = arith.constant 0 : index
    %4 = vector.load %arg3[%c0_5, %c0_6] : memref<128x128xbf16, #tpu.memory_space<vmem>>, vector<128x128xbf16>
    %cst = arith.constant dense<0.000000e+00> : vector<16x128xf32>
    %5 = tpu.matmul %1, %4, %cst {dimension_numbers = #tpu.dot_dimension_numbers<[1], [0], [0], [1], [0, 0, 1, 1], [], []>} : vector<16x128xbf16>, vector<128x128xbf16>, vector<16x128xf32> -> vector<16x128xf32>
    %c0_7 = arith.constant 0 : index
    %c0_8 = arith.constant 0 : index
    %6 = vector.load %arg4[%c0_7, %c0_8] : memref<1x128xf32, #tpu.memory_space<vmem>>, vector<1x128xf32>
    %7 = vector.broadcast %6 : vector<1x128xf32> to vector<16x128xf32>
    %8 = arith.addf %5, %7 : vector<16x128xf32>
    %cst_9 = arith.constant 0.000000e+00 : f32
    %9 = vector.broadcast %cst_9 : f32 to vector<16x128xf32>
    %10 = arith.maximumf %8, %9 : vector<16x128xf32>
    %c0_10 = arith.constant 0 : index
    %c0_11 = arith.constant 0 : index
    %11 = vector.load %arg5[%c0_10, %c0_11] : memref<128x128xbf16, #tpu.memory_space<vmem>>, vector<128x128xbf16>
    %c0_12 = arith.constant 0 : index
    %c0_13 = arith.constant 0 : index
    %12 = vector.load %arg6[%c0_12, %c0_13] : memref<1x128xf32, #tpu.memory_space<vmem>>, vector<1x128xf32>
    %13 = vector.shape_cast %12 : vector<1x128xf32> to vector<1x128xf32>
    %14 = vector.broadcast %13 : vector<1x128xf32> to vector<16x128xf32>
    %15 = arith.truncf %10 : vector<16x128xf32> to vector<16x128xbf16>
    %cst_14 = arith.constant dense<0.000000e+00> : vector<16x128xf32>
    %16 = tpu.matmul %3, %15, %cst_14 {dimension_numbers = #tpu.dot_dimension_numbers<[1], [0], [0], [1], [0, 0, 1, 1], [], []>} : vector<16x16xbf16>, vector<16x128xbf16>, vector<16x128xf32> -> vector<16x128xf32>
    %17 = arith.truncf %16 : vector<16x128xf32> to vector<16x128xbf16>
    %cst_15 = arith.constant dense<0.000000e+00> : vector<16x128xf32>
    %18 = tpu.matmul %17, %11, %cst_15 {dimension_numbers = #tpu.dot_dimension_numbers<[1], [0], [0], [1], [0, 0, 1, 1], [], []>} : vector<16x128xbf16>, vector<128x128xbf16>, vector<16x128xf32> -> vector<16x128xf32>
    %19 = arith.addf %18, %14 : vector<16x128xf32>
    %cst_16 = arith.constant 0.000000e+00 : f32
    %20 = vector.broadcast %cst_16 : f32 to vector<16x128xf32>
    %21 = arith.maximumf %19, %20 : vector<16x128xf32>
    %22 = arith.truncf %21 : vector<16x128xf32> to vector<16x128xbf16>
    %cst_17 = arith.constant dense<0.000000e+00> : vector<16x128xf32>
    %23 = tpu.matmul %3, %22, %cst_17 {dimension_numbers = #tpu.dot_dimension_numbers<[1], [0], [0], [1], [0, 0, 1, 1], [], []>} : vector<16x16xbf16>, vector<16x128xbf16>, vector<16x128xf32> -> vector<16x128xf32>
    %24 = arith.truncf %23 : vector<16x128xf32> to vector<16x128xbf16>
    %cst_18 = arith.constant dense<0.000000e+00> : vector<16x128xf32>
    %25 = tpu.matmul %24, %11, %cst_18 {dimension_numbers = #tpu.dot_dimension_numbers<[1], [0], [0], [1], [0, 0, 1, 1], [], []>} : vector<16x128xbf16>, vector<128x128xbf16>, vector<16x128xf32> -> vector<16x128xf32>
    %26 = arith.addf %25, %14 : vector<16x128xf32>
    %cst_19 = arith.constant 0.000000e+00 : f32
    %27 = vector.broadcast %cst_19 : f32 to vector<16x128xf32>
    %28 = arith.maximumf %26, %27 : vector<16x128xf32>
    %29 = arith.truncf %28 : vector<16x128xf32> to vector<16x128xbf16>
    %cst_20 = arith.constant dense<0.000000e+00> : vector<16x128xf32>
    %30 = tpu.matmul %3, %29, %cst_20 {dimension_numbers = #tpu.dot_dimension_numbers<[1], [0], [0], [1], [0, 0, 1, 1], [], []>} : vector<16x16xbf16>, vector<16x128xbf16>, vector<16x128xf32> -> vector<16x128xf32>
    %31 = arith.truncf %30 : vector<16x128xf32> to vector<16x128xbf16>
    %cst_21 = arith.constant dense<0.000000e+00> : vector<16x128xf32>
    %32 = tpu.matmul %31, %11, %cst_21 {dimension_numbers = #tpu.dot_dimension_numbers<[1], [0], [0], [1], [0, 0, 1, 1], [], []>} : vector<16x128xbf16>, vector<128x128xbf16>, vector<16x128xf32> -> vector<16x128xf32>
    %33 = arith.addf %32, %14 : vector<16x128xf32>
    %cst_22 = arith.constant 0.000000e+00 : f32
    %34 = vector.broadcast %cst_22 : f32 to vector<16x128xf32>
    %35 = arith.maximumf %33, %34 : vector<16x128xf32>
    %36 = tpu.iota {dimensions = array<i32: 0>} : vector<16x1xi32>
    %c8_i32 = arith.constant 8 : i32
    %37 = vector.broadcast %c8_i32 : i32 to vector<16x1xi32>
    %38 = arith.cmpi slt, %36, %37 : vector<16x1xi32>
    %cst_23 = arith.constant 1.000000e+00 : f32
    %cst_24 = arith.constant 0.000000e+00 : f32
    %39 = vector.broadcast %cst_23 : f32 to vector<16x1xf32>
    %40 = vector.broadcast %cst_24 : f32 to vector<16x1xf32>
    %41 = arith.select %38, %39, %40 : vector<16x1xi1>, vector<16x1xf32>
    %42 = vector.broadcast %41 : vector<16x1xf32> to vector<16x128xf32>
    %43 = arith.mulf %35, %42 : vector<16x128xf32>
    %cst_25 = arith.constant dense<0.000000e+00> : vector<128xf32>
    %44 = vector.multi_reduction <add>, %43, %cst_25 [0] : vector<16x128xf32> to vector<128xf32>
    %45 = vector.shape_cast %44 : vector<128xf32> to vector<1x128xf32>
    %cst_26 = arith.constant 1.250000e-01 : f32
    %46 = vector.broadcast %cst_26 : f32 to vector<1x128xf32>
    %47 = arith.mulf %45, %46 : vector<1x128xf32>
    %c0_27 = arith.constant 0 : index
    %c0_28 = arith.constant 0 : index
    %c0_29 = arith.constant 0 : index
    %48 = vector.load %arg7[%c0_27, %c0_28, %c0_29] : memref<1x1x128xf32, #tpu.memory_space<vmem>>, vector<1x1x128xf32>
    %49 = vector.shape_cast %48 : vector<1x1x128xf32> to vector<1x128xf32>
    %50 = vector.shape_cast %47 : vector<1x128xf32> to vector<1x1x128xf32>
    tpu.vector_store %arg7[%c0_27, %c0_28, %c0_29], %50 {strides = array<i32>} : memref<1x1x128xf32, #tpu.memory_space<vmem>>, vector<1x1x128xf32>,
    return
  }
  func.func @transform_0(%arg0: i32) -> (i32, i32, i32) {
    %c0_i32 = arith.constant 0 : i32
    %c0_i32_0 = arith.constant 0 : i32
    %c0_i32_1 = arith.constant 0 : i32
    return %arg0, %c0_i32, %c0_i32_0 : i32, i32, i32
  }
  func.func @transform_1(%arg0: i32) -> (i32, i32, i32) {
    %c0_i32 = arith.constant 0 : i32
    %c0_i32_0 = arith.constant 0 : i32
    %c0_i32_1 = arith.constant 0 : i32
    return %arg0, %c0_i32, %c0_i32_0 : i32, i32, i32
  }
  func.func @transform_2(%arg0: i32) -> (i32, i32) {
    %c0_i32 = arith.constant 0 : i32
    %c0_i32_0 = arith.constant 0 : i32
    %c0_i32_1 = arith.constant 0 : i32
    return %c0_i32, %c0_i32_0 : i32, i32
  }
  func.func @transform_3(%arg0: i32) -> (i32, i32) {
    %c0_i32 = arith.constant 0 : i32
    %c0_i32_0 = arith.constant 0 : i32
    %c0_i32_1 = arith.constant 0 : i32
    return %c0_i32, %c0_i32_0 : i32, i32
  }
  func.func @transform_4(%arg0: i32) -> (i32, i32) {
    %c0_i32 = arith.constant 0 : i32
    %c0_i32_0 = arith.constant 0 : i32
    %c0_i32_1 = arith.constant 0 : i32
    return %c0_i32, %c0_i32_0 : i32, i32
  }
  func.func @transform_5(%arg0: i32) -> (i32, i32) {
    %c0_i32 = arith.constant 0 : i32
    %c0_i32_0 = arith.constant 0 : i32
    %c0_i32_1 = arith.constant 0 : i32
    return %c0_i32, %c0_i32_0 : i32, i32
  }
  func.func @transform_6(%arg0: i32) -> (i32, i32, i32) {
    %c0_i32 = arith.constant 0 : i32
    %c0_i32_0 = arith.constant 0 : i32
    %c0_i32_1 = arith.constant 0 : i32
    return %arg0, %c0_i32, %c0_i32_0 : i32, i32, i32
  }
}

</mosaic_0001>

<bundles_post_ra>
// kernel: tpu_custom_call.1
= control target key start
LH: loop header
LB: loop body
LE: loop exit
PB: predicated region body
PF: predicated region fallthrough
CT: control target
= control target key end

     0   :  { %s1376_s0 = inlined_call_operand.hbm [shape: bf16[8,16,128], index: 0, kind: input, shape index: {}]   ;;  %s1377_s1 = inlined_call_operand.hbm [shape: bf16[8,16,16], index: 1, kind: input, shape index: {}]   ;;  %s1378_s2 = inlined_call_operand.hbm [shape: bf16[128,128], index: 2, kind: input, shape index: {}]   ;;  %s1379_s3 = inlined_call_operand.vmem [shape: f32[1,128], index: 3, kind: input, shape index: {}]   ;;  %s1380_s4 = inlined_call_operand.hbm [shape: bf16[128,128], index: 4, kind: input, shape index: {}]   ;;  %s1381_s5 = inlined_call_operand.vmem [shape: f32[1,128], index: 5, kind: input, shape index: {}]   ;;  %s1382_s6 = inlined_call_operand.hbm [shape: f32[8,1,128], index: 6, kind: output, shape index: {}]  }
   0x1   :  { %1388 = sst [smem:[#allocation18_spill]] %s1376_s0 }
   0x2   :  { %1389 = sst [smem:[#allocation19_spill]] %s1378_s2 }
   0x3   :  { %1390 = sst [smem:[#allocation20_spill]] %s1380_s4 }
   0x4   :  { %11 = vsyncpa [#allocation3], 0 }
   0x5   :  { %13 = vsyncpa [#allocation3 + $0x1], 0 }
   0x6   :  { %14 = vsyncpa [#allocation6], 0 }
   0x7   :  { %16 = vsyncpa [#allocation6 + $0x1], 0 }
   0x8   :  { %17 = vsyncpa [#allocation9], 0 }
   0x9   :  { %18 = vsyncpa [#allocation4], 0 }
   0xa   :  { %20 = vsyncpa [#allocation4 + $0x1], 0  ;;  %s1181_s21 = smov 0   ;;  %s1183_s22 = smov 0  }
   0xb   :  { %s1185_s23 = smov 0   ;;  %s1187_s24 = smov 0  }
   0xc LB: > { %1391 = sst [smem:[#allocation16_spill]] %s1136_s23  ;;  %s1202_s25 = sadd.s32 4294967295, %s1140_s24   ;;  %s1140_s24 = sphi %s1187_s24, %s1407_s24   ;;  %s1136_s23 = sphi %s1185_s23, %s1404_s23   ;;  %s1132_s22 = sphi %s1183_s22, %s1406_s22   ;;  %s1128_s21 = sphi %s1181_s21, %s1405_s21  }
   0xd   : > { %s753_s26 = sadd.s32 4294967294, %s1140_s24   ;;  %p46_p0 = scmp.ne.s32.totalorder %s1132_s22, %s1128_s21 }
   0xe   : > { %p47_p1 = scmp.eq.s32.totalorder %s1202_s25, 0  ;;  %p180_p2 = scmp.eq.s32.totalorder %s1202_s25, 7 }
   0xf   : > { %p186_p3 = scmp.eq.s32.totalorder %s753_s26, 7  ;;  %p754_p5 = scmp.ge.s32.totalorder %s1140_s24, 1 }
  0x10   : > { %p1211_p4 = por %p47_p1, %p46_p0  ;;  %p193_p7 = scmp.lt.s32.totalorder %s1140_s24, 9 }
  0x11   : > { %p1216_p6 = por %p186_p3, %p46_p0  ;;  %s1394_s2 = sld [smem:[#allocation19_spill]] }
  0x12   : > { %p1224_p8 = pnand %p754_p5, %p193_p7  ;;  %s1142_s9 = smov [#allocation7]  }
  0x13   : > { %s206_s10 = sshll.u32 %s1142_s9, 4  ;;  %s1396_s4 = sld [smem:[#allocation20_spill]]  ;;  %s207_s10 = int_to_ptr.vmem [resolvable:$true] %s206_s10 }
  0x14   : > { %p880_p9 = pneg %p1224_p8  ;;  %s1383_s14 = smov 64  }
  0x15   : > { %s1385_s15 = smov 4   ;;  %s1145_s16 = smov [#allocation8]  }
  0x16   : > { %p881_p10 = pnand %p880_p9, %p47_p1  ;;  %s223_s17 = sshll.u32 %s1145_s16, 4  ;;  %s224_s17 = int_to_ptr.vmem [resolvable:$true] %s223_s17 }
  0x17   : > { %s204_s7 = sshll.u32 %s1394_s2, 4  ;;  %s1242_s18 = sadd.s32 1, %s1140_s24   ;;  %s205_s7 = int_to_ptr.hbm [resolvable:$true] %s204_s7 }
  0x18   : > { %883 = dma.hbm_to_vmem [thread:$0]  (!%p881_p10), %s205_s7, 1024, %s207_s10, [#allocation6], %s1383_s14, %s1383_s14, %s1385_s15  }
  0x19   : > { %s221_s13 = sshll.u32 %s1396_s4, 4  ;;  %s33_s19 = sadd.s32 1, %s1136_s23  ;;  %s222_s13 = int_to_ptr.hbm [resolvable:$true] %s221_s13 }
  0x1a   : > { %886 = dma.hbm_to_vmem [thread:$0]  (!%p881_p10), %s222_s13, 1024, %s224_s17, [#allocation9], %s1383_s14, %s1383_s14, %s1385_s15  }
  0x1b   : > { %s30_s20 = ssub.s32 %s1140_s24, %s1242_s18  ;;  %p40_p11 = scmp.ne.s32.totalorder %s1136_s23, %s1132_s22 }
  0x1c   : > { %p31_p12 = scmp.eq.s32.totalorder %s30_s20, 0  ;;  %p41_p13 = scmp.eq.s32.totalorder %s1140_s24, 0 }
  0x1d   : > { %p1252_p0 = por %p180_p2, %p40_p11  ;;  %p900_p3 = scmp.lt.s32.totalorder %s1140_s24, 8 }
  0x1e   : > { %s1258_s29 = scalar_select %p31_p12, %s1136_s23, %s33_s19  }
  0x1f   : > { %p42_p5 = por %p41_p13, %p40_p11  ;;  %s240_s30 = sand.u32 1, %s1136_s23  }
  0x20   : > { %1398 = sst [smem:[#allocation17_spill]] %s1258_s29  ;;  %s1261_s7 = sshll.u32 %s240_s30, 3 }
  0x21   : > { %s846_s9 = sshll.u32 %s1140_s24, 3  ;;  %s1399_s0 = sld [smem:[#allocation18_spill]] }
  0x22   : > { %s244_s13 = scalar_lea.vmem [#allocation2], %s1261_s7  ;;  %p1268_p2 = pnand %p900_p3, %p42_p5 }
  0x23   : > { %s252_s16 = sshll.u32 %s244_s13, 4  ;;  %s271_s15 = scalar_lea.hbm %s1377_s1, %s846_s9  ;;  %s253_s16 = int_to_ptr.vmem [resolvable:$true] %s252_s16 }
  0x24   : > { %s272_s2 = sshll.u32 %s271_s15, 4  ;;  %s241_s4 = scalar_lea.sflag [#allocation3], %s240_s30  ;;  %s273_s2 = int_to_ptr.hbm [resolvable:$true] %s272_s2 }
  0x25   : > { %p1006_p9 = pneg %p1268_p2 }
  0x27   : > { %s249_s12 = scalar_lea.hbm %s1399_s0, %s846_s9  ;;  %s1009_s13 = scalar_lea.hbm %s1399_s0, 64 }
  0x28   : > { %s250_s17 = sshll.u32 %s249_s12, 4  ;;  %s251_s17 = int_to_ptr.hbm [resolvable:$true] %s250_s17 }
  0x29   : > { %s1002_s29 = sshra.s32 %s251_s17, 4  ;;  %s1003_s29 = int_to_ptr.hbm [resolvable:$true] %s1002_s29 }
  0x2a   : > { %s1004_s10 = scalar_lea.hbm %s1003_s29, 8  ;;  %p1010_p12 = scmp.lt.s32.totalorder %s1003_s29, %s1399_s0 }
  0x2b   : > { %p1005_p7 = scmp.ne.s32.totalorder %s1003_s29, %s1004_s10  ;;  %p1011_p13 = scmp.lt.s32.totalorder %s1009_s13, %s1004_s10 }
  0x2d   : > { %p1007_p10 = pnand %p1006_p9, %p1005_p7  ;;  %p1012_p3 = por %p1011_p13, %p1010_p12 }
  0x2f   : > { %p1008_p11 = pneg %p1007_p10 }
  0x31   : > { %p1013_p5 = pnand %p1012_p3, %p1008_p11 }
  0x33   : > { %1016 = shalt.err (!%p1013_p5)
}
  0x34   : > { %s1401_s15 = smov 4   ;;  %s1402_s30 = smov 64  }
  0x35   : > { %890 = dma.hbm_to_vmem [thread:$0]  (!%p1268_p2), %s251_s17, 128, %s253_s16, %s241_s4, %s1402_s30, %s1402_s30, %s1401_s15  }
  0x36   : > { %s266_s9 = scalar_lea.vmem [#allocation5], %s1261_s7  ;;  %s262_s12 = sand.u32 1, %s1140_s24  }
  0x37   : > { %s274_s11 = sshll.u32 %s266_s9, 4  ;;  %s263_s14 = scalar_lea.sflag [#allocation6], %s262_s12  ;;  %s275_s11 = int_to_ptr.vmem [resolvable:$true] %s274_s11 }
  0x38   : > { %s1032_s29 = sshra.s32 %s273_s2, 4  ;;  %s1039_s0 = scalar_lea.hbm %s1377_s1, 64  ;;  %s1033_s29 = int_to_ptr.hbm [resolvable:$true] %s1032_s29 }
  0x39   : > { %s1034_s10 = scalar_lea.hbm %s1033_s29, 8  ;;  %p1040_p12 = scmp.lt.s32.totalorder %s1033_s29, %s1377_s1 }
  0x3a   : > { %p1035_p7 = scmp.ne.s32.totalorder %s1033_s29, %s1034_s10  ;;  %p1041_p13 = scmp.lt.s32.totalorder %s1039_s0, %s1034_s10 }
  0x3c   : > { %p1037_p10 = pnand %p1035_p7, %p1006_p9  ;;  %p1042_p3 = por %p1041_p13, %p1040_p12 }
  0x3e   : > { %p1038_p11 = pneg %p1037_p10 }
  0x40   : > { %p1043_p5 = pnand %p1042_p3, %p1038_p11 }
  0x42   : > { %1046 = shalt.err (!%p1043_p5)
}
  0x43   : > { %893 = dma.hbm_to_vmem [thread:$0]  (!%p1268_p2), %s273_s2, 128, %s275_s11, %s263_s14, %s1402_s30, %s1402_s30, %s1401_s15  }
  0x44   : > { %286 = sbr.rel (%p1224_p8) target bundleno = 1127 (0x467), region = 44  ;;  %s1310_s7 = sand.u32 (!%p1224_p8), 1, %s1132_s22  }
  0x45   : > { %s765_s23 = sshll.u32 (!%p1224_p8), %s1310_s7, 3  ;;  %s289_s0 = scalar_lea.sflag (!%p1224_p8), [#allocation3], %s1310_s7 }
  0x46   : > { %s292_s16 = scalar_lea.vmem (!%p1224_p8), [#allocation2], %s765_s23 }
  0x49   : > { %1107 = dma.done.wait (%p1211_p4), %s289_s0, 128  }
  0x4a   : > { %1109 = vsyncadd (%p1211_p4), %s289_s0, 4294967168  ;;  %s298_s2 = sand.u32 1, %s1202_s25   ;;  %s1319_s8 = scalar_lea.vmem [#allocation5], %s765_s23 }
  0x4b   : > { %s299_s17 = scalar_lea.sflag [#allocation6], %s298_s2 }
  0x4c   : > { %1111 = dma.done.wait (%p1211_p4), %s299_s17, 128  }
  0x4d   : > { %1113 = vsyncadd (%p1211_p4), %s299_s17, 4294967168 }
  0x4e   : > { %1115 = dma.done.wait (%p47_p1), [#allocation6], 1024  }
  0x4f   : > { %1117 = vsyncadd (%p47_p1), [#allocation6], 4294966272 }
  0x50   : > { %1119 = dma.done.wait (%p47_p1), [#allocation9], 1024  }
  0x51   : > { %1121 = vsyncadd (%p47_p1), [#allocation9], 4294966272  ;;  %v857_v0 = vld [vmem:[#allocation7 + $0x38] sm:$0xff]  ;;  %v856_v1 = vld [vmem:[#allocation7 + $0x30] sm:$0xff]  ;;  %vm467_vm0 = vcmask 130048   ;;  %s641_s12 = scalar_lea.hbm %s1382_s6, %s1202_s25  ;;  %s345_s14 = scalar_lea.vmem [#allocation10], %s1310_s7 }
  0x52   : > { %425 = vmatpush.bf16.msra.mxu0 %v857_v0  ;;  %v855_v2 = vld [vmem:[#allocation7 + $0x28] sm:$0xff]  ;;  %v854_v3 = vld [vmem:[#allocation7 + $0x20] sm:$0xff]  ;;  %v853_v4 = vld [vmem:[#allocation7 + $0x18] sm:$0xff]  ;;  %s643_s29 = sshll.u32 %s345_s14, 4  ;;  %s645_s10 = sshll.u32 %s641_s12, 4  ;;  %s644_s29 = int_to_ptr.vmem [resolvable:$true] %s643_s29  ;;  %s646_s10 = int_to_ptr.hbm [resolvable:$true] %s645_s10 }
  0x53   : > { %v852_v5 = vld [vmem:[#allocation7 + $0x10] sm:$0xff]  ;;  %v851_v6 = vld [vmem:[#allocation7 + $0x8] sm:$0xff]  ;;  %v850_v7 = vld [vmem:[#allocation7] sm:$0xff]  ;;  %s633_s13 = scalar_lea.sflag [#allocation4], %s1310_s7  ;;  %s1076_s19 = sshra.s32 %s646_s10, 4  ;;  %s1077_s19 = int_to_ptr.hbm [resolvable:$true] %s1076_s19 }
  0x54   : > { %v848_v8 = vld [vmem:[%s292_s16] sm:$0xff]  ;;  %v865_v9 = vld [vmem:[#allocation8 + $0x38] sm:$0xff]  ;;  %v864_v10 = vld [vmem:[#allocation8 + $0x30] sm:$0xff]  ;;  %s1078_s4 = scalar_lea.hbm %s1077_s19, 1  ;;  %s1082_s25 = scalar_lea.hbm %s1382_s6, 8 }
  0x55   : > { %534 = vmatpush.bf16.msra.mxu2 %v865_v9  ;;  %v863_v11 = vld [vmem:[#allocation8 + $0x28] sm:$0xff]  ;;  %v862_v12 = vld [vmem:[#allocation8 + $0x20] sm:$0xff]  ;;  %v861_v14 = vld [vmem:[#allocation8 + $0x18] sm:$0xff]  ;;  %p1079_p1 = scmp.ne.s32.totalorder %s1077_s19, %s1078_s4  ;;  %p1083_p2 = scmp.lt.s32.totalorder %s1077_s19, %s1382_s6 }
  0x56   : > { %426 = vmatpush.bf16.msra.mxu0 %v856_v1  ;;  %v940_v15 = vld [vmem:[%s1379_s3] ss:$0 sm:$0xff]  ;;  %v849_v22 = vld [vmem:[%s1319_s8] sm:$0xff]  ;;  %v859_v24 = vld [vmem:[#allocation8 + $0x8] sm:$0xff]  ;;  %p1084_p9 = scmp.lt.s32.totalorder %s1082_s25, %s1078_s4 }
  0x57   : > { %v860_v23 = vld [vmem:[#allocation8 + $0x10] sm:$0xff]  ;;  %v858_v25 = vld [vmem:[#allocation8] sm:$0xff]  ;;  %p1080_p4 = pnand %p1079_p1, %p1252_p0 }
  0x58   : > { %v941_v30 = vld [vmem:[%s1381_s5] ss:$0 sm:$0xff]  ;;  %p1085_p7 = por %p1084_p9, %p1083_p2 }
  0x59   : > { %535 = vmatpush.bf16.msra.mxu2 %v864_v10  ;;  %p1081_p8 = pneg %p1080_p4 }
  0x5a   : > { %427 = vmatpush.bf16.msra.mxu0 %v855_v2 }
  0x5b   : > { %p1086_p10 = pnand %p1085_p7, %p1081_p8 }
  0x5d   : > { %536 = vmatpush.bf16.msra.mxu2 %v863_v11 }
  0x5e   : > { %428 = vmatpush.bf16.msra.mxu0 %v854_v3 }
  0x61   : > { %537 = vmatpush.bf16.msra.mxu2 %v862_v12 }
  0x62   : > { %429 = vmatpush.bf16.msra.mxu0 %v853_v4 }
  0x65   : > { %538 = vmatpush.bf16.msra.mxu2 %v861_v14 }
  0x66   : > { %430 = vmatpush.bf16.msra.mxu0 %v852_v5 }
  0x69   : > { %539 = vmatpush.bf16.msra.mxu2 %v860_v23 }
  0x6a   : > { %431 = vmatpush.bf16.msra.mxu0 %v851_v6 }
  0x6d   : > { %540 = vmatpush.bf16.msra.mxu2 %v859_v24 }
  0x6e   : > { %432 = vmatpush.bf16.msra.mxu0 %v850_v7 }
  0x71   : > { %433 = vmatmul.bf16.vlgmr.msra.gmra.mxu0 %v848_v8  ;;  %541 = vmatpush.bf16.msra.mxu2 %v858_v25 }
  0xee   : > { %v434_v13 = vpop.f32.mrf.mxu0 }
  0xef   : > { %v435_v16 = vadd.f32 %v940_v15, %v434_v13 }
  0xf1   : > { %v439_v19 = vmax.f32 %v435_v16, 0.0 }
  0xf6   : > { %v436_v17 = vpop.f32.mrf.mxu0 }
  0xf7   : > { %v437_v18 = vadd.f32 %v940_v15, %v436_v17 }
  0xf9   : > { %v440_v20 = vmax.f32 %v437_v18, 0.0 }
  0xfb   : > { %v461_v21 = vpack.c.bf16 %v440_v20, %v439_v19 }
  0xfd   : > { %478 = vmatpush.bf16.msra.mxu1 %v461_v21 }
 0x100   : > { %809 = vmatmul.msk.bf16.vlgmr.msra.gmra.mxu1 %vm467_vm0, %v849_v22 }
 0x101   : > { %566 = vmatpush.bf16.msrb.mxu1 %v865_v9 }
 0x105   : > { %567 = vmatpush.bf16.msrb.mxu1 %v864_v10 }
 0x109   : > { %568 = vmatpush.bf16.msrb.mxu1 %v863_v11 }
 0x10d   : > { %569 = vmatpush.bf16.msrb.mxu1 %v862_v12 }
 0x111   : > { %570 = vmatpush.bf16.msrb.mxu1 %v861_v14 }
 0x115   : > { %571 = vmatpush.bf16.msrb.mxu1 %v860_v23 }
 0x119   : > { %572 = vmatpush.bf16.msrb.mxu1 %v859_v24 }
 0x11d   : > { %573 = vmatpush.bf16.msrb.mxu1 %v858_v25 }
 0x17d   : > { %v480_v26 = vpop.f32.mrf.mxu1 }
 0x185   : > { %v482_v27 = vpop.f32.mrf.mxu1 }
 0x186   : > { %v485_v28 = vpack.c.bf16 %v482_v27, %v480_v26 }
 0x188   : > { %542 = vmatmul.bf16.vlgmr.msra.gmra.mxu2 %v485_v28 }
 0x20b   : > { %v543_v29 = vpop.f32.mrf.mxu2 }
 0x20c   : > { %v544_v31 = vadd.f32 %v941_v30, %v543_v29 }
 0x20e   : > { %v548_v34 = vmax.f32 %v544_v31, 0.0 }
 0x213   : > { %v545_v32 = vpop.f32.mrf.mxu2 }
 0x214   : > { %v546_v33 = vadd.f32 %v941_v30, %v545_v32 }
 0x216   : > { %v549_v35 = vmax.f32 %v546_v33, 0.0 }
 0x218   : > { %v550_v36 = vpack.c.bf16 %v549_v35, %v548_v34 }
 0x21a   : > { %558 = vmatpush.bf16.msrb.mxu0 %v550_v36 }
 0x21d   : > { %842 = vmatmul.msk.bf16.vlgmr.msrb.gmra.mxu0 %vm467_vm0, %v849_v22 }
 0x29a   : > { %v560_v37 = vpop.f32.mrf.mxu0 }
 0x2a2   : > { %v562_v38 = vpop.f32.mrf.mxu0 }
 0x2a3   : > { %v565_v39 = vpack.c.bf16 %v562_v38, %v560_v37 }
 0x2a5   : > { %574 = vmatmul.bf16.vlgmr.msrb.gmra.mxu1 %v565_v39 }
 0x322   : > { %v575_v40 = vpop.f32.mrf.mxu1 }
 0x323   : > { %v576_v41 = vadd.f32 %v941_v30, %v575_v40 }
 0x325   : > { %v580_v44 = vmax.f32 %v576_v41, 0.0 }
 0x32a   : > { %v577_v42 = vpop.f32.mrf.mxu1 }
 0x32b   : > { %v578_v43 = vadd.f32 %v941_v30, %v577_v42 }
 0x32d   : > { %v581_v45 = vmax.f32 %v578_v43, 0.0 }
 0x32f   : > { %v582_v46 = vpack.c.bf16 %v581_v45, %v580_v44 }
 0x331   : > { %590 = vmatpush.bf16.msra.mxu3 %v582_v46 }
 0x334   : > { %843 = vmatmul.msk.bf16.vlgmr.msra.gmra.mxu3 %vm467_vm0, %v849_v22 }
 0x335   : > { %598 = vmatpush.bf16.msrb.mxu3 %v865_v9 }
 0x339   : > { %599 = vmatpush.bf16.msrb.mxu3 %v864_v10 }
 0x33d   : > { %600 = vmatpush.bf16.msrb.mxu3 %v863_v11 }
 0x341   : > { %601 = vmatpush.bf16.msrb.mxu3 %v862_v12 }
 0x345   : > { %602 = vmatpush.bf16.msrb.mxu3 %v861_v14 }
 0x349   : > { %603 = vmatpush.bf16.msrb.mxu3 %v860_v23 }
 0x34d   : > { %604 = vmatpush.bf16.msrb.mxu3 %v859_v24 }
 0x351   : > { %605 = vmatpush.bf16.msrb.mxu3 %v858_v25 }
 0x3b7   : > { %v592_v47 = vpop.f32.mrf.mxu3 }
 0x3bf   : > { %v594_v48 = vpop.f32.mrf.mxu3 }
 0x3c0   : > { %v597_v49 = vpack.c.bf16 %v594_v48, %v592_v47 }
 0x3c2   : > { %606 = vmatmul.bf16.vlgmr.msrb.gmra.mxu3 %v597_v49 }
 0x445   : > { %v607_v50 = vpop.f32.mrf.mxu3 }
 0x446   : > { %v608_v52 = vadd.f32 %v941_v30, %v607_v50 }
 0x448   : > { %v612_v55 = vmax.f32 %v608_v52, 0.0 }
 0x44d   : > { %v609_v51 = vpop.f32.mrf.mxu3 }
 0x44e   : > { %v610_v53 = vadd.f32 %v941_v30, %v609_v51 }
 0x450   : > { %v613_v54 = vmax.f32 %v610_v53, 0.0 }
 0x452   : > { %v622_v56 = vmul.f32 0.0, %v613_v54 }
 0x454   : > { %v623_v57 = vadd.f32 %v622_v56, %v612_v55 }
 0x456   : > { %v624_v58 = vrot.slane %v623_v57, 4 }
 0x458   : > { %v625_v59 = vadd.f32 %v624_v58, %v623_v57 }
 0x45a   : > { %v626_v60 = vrot.slane %v625_v59, 2 }
 0x45c   : > { %v627_v61 = vadd.f32 %v626_v60, %v625_v59 }
 0x45e   : > { %v628_v62 = vrot.slane %v627_v61, 1 }
 0x460   : > { %v629_v63 = vadd.f32 %v628_v62, %v627_v61 }
 0x462   : > { %v630_v0 = vmul.f32 0.125, %v629_v63 }
 0x464   : > { %631 = vst [vmem:[%s345_s14] sm:$0x1] %v630_v0 }
 0x465   : > { %1089 = shalt.err (!%p1086_p10)
}
 0x466   : > { %878 = dma.vmem_to_hbm [thread:$0]  (%p1252_p0), %s644_s29, 16, %s646_s10, %s633_s13  }
 0x467 PF: > { %p903_p11 = scmp.ge.s32.totalorder %s1140_s24, 2  ;;  %s657_s7 = sand.u32 1, %s1128_s21  }
 0x468   : > { %s658_s17 = scalar_lea.sflag [#allocation4], %s657_s7 }
 0x469   : > { %p895_p12 = pnand %p903_p11, %p1216_p6 }
 0x46b   : > { %p896_p13 = pneg %p895_p12 }
 0x46d   : > { %1123 = dma.done.wait (%p896_p13), %s658_s17, 16  }
 0x46e   : > { %1125 = vsyncadd (%p896_p13), %s658_s17, 4294967280  ;;  %s1403_s8 = sld [smem:[#allocation16_spill]]  ;;  %p23_p3 = scmp.ge.s32.totalorder %s1242_s18, 10  }
 0x46f   : > { %s1404_s23 = sld [smem:[#allocation17_spill]]  ;;  %s1405_s21 = smov %s1132_s22 }
 0x470   : > { %s1407_s24 = smov %s1242_s18  ;;  %25 = sbr.rel (!%p23_p3) target bundleno = 12 (0xc), region = 110 }
 0x474   : > { %s1406_s22 = smov %s1403_s8 }
 0x475   :  { %663 = vsyncpa [#allocation3], 1 }
 0x476   :  { %665 = vsyncpa [#allocation3 + $0x1], 1 }
 0x477   :  { %666 = vsyncpa [#allocation6], 1 }
 0x478   :  { %668 = vsyncpa [#allocation6 + $0x1], 1 }
 0x479   :  { %669 = vsyncpa [#allocation9], 1 }
 0x47a   :  { %670 = vsyncpa [#allocation4], 1 }
 0x47b   :  { %672 = vsyncpa [#allocation4 + $0x1], 1 }

</bundles_post_ra>
